<compile_context>
chip_gen: v5e
topology: v5e:2x2
jax: 0.10.0
libtpu: 0.0.40
codegen_flags: <defaults>
</compile_context>

<pallas_src>
import jax
import jax.numpy as jnp
from jax.experimental import pallas as pl
from jax.experimental.pallas import tpu as pltpu


ALPHA_INIT = 15.0  # matches nn.Module __init__ default (trainable Parameter)


def _softplus_sq_kernel(params_ref, x_ref, o_ref):
    # params_ref: (2,) f32 in SMEM -> [beta, 1/beta]
    # x_ref / o_ref: (tile_rows, lanes) tiles in VMEM (native dtype I/O).
    beta = params_ref[0]
    inv_beta = params_ref[1]
    z = beta * x_ref[...].astype(jnp.float32)
    # stable softplus: max(z, 0) + log1p(exp(-|z|)), then divide by beta
    sp = (jnp.maximum(z, 0.0) + jnp.log1p(jnp.exp(-jnp.abs(z)))) * inv_beta
    o_ref[...] = (sp * sp).astype(o_ref.dtype)


def _choose_slab(n):
    """Pick a wide lane-dense last dim (multiple of 128) that divides n if possible."""
    for lanes in (2048, 1024, 512, 256, 128):
        if n % lanes == 0:
            return lanes, 0
    lanes = 128
    pad = (-n) % lanes
    return lanes, pad


def softplus_squared_pallas(x, alpha=ALPHA_INIT):
    """y = (softplus(alpha^2 * x) / alpha^2)^2, elementwise. Same shape/dtype as x."""
    orig_shape = x.shape
    dtype = x.dtype
    n = x.size

    lanes, pad = _choose_slab(n)
    x_flat = x.reshape(-1)
    if pad:
        # TODO(synk): rare ragged-size fallback (n % 128 != 0); costs one extra
        # pass over the input for the pad copy.
        x_flat = jnp.pad(x_flat, (0, pad))
    rows = (n + pad) // lanes
    x2d = x_flat.reshape(rows, lanes)

    # ~2 MiB (f32) blocks: on the flat part of the tile-size vs roofline curve.
    # Double-buffered in+out at f32 is <= 8 MiB of VMEM -> fits default limits.
    target_elems = 512 * 1024
    tile_rows = max(1, target_elems // lanes)
    if tile_rows >= rows:
        tile_rows = rows                           # full dim -> always legal
    else:
        tile_rows = max(8, (tile_rows // 8) * 8)   # keep (8, 128) tiling legal

    alpha_f32 = jnp.asarray(alpha, dtype=jnp.float32)
    beta = alpha_f32 * alpha_f32
    params = jnp.stack([beta, 1.0 / beta])         # (2,) f32 -> SMEM

    grid = (pl.cdiv(rows, tile_rows),)

    out2d = pl.pallas_call(
        _softplus_sq_kernel,
        out_shape=jax.ShapeDtypeStruct((rows, lanes), dtype),
        grid=grid,
        in_specs=[
            pl.BlockSpec(memory_space=pltpu.SMEM),                # [beta, 1/beta]
            pl.BlockSpec((tile_rows, lanes), lambda i: (i, 0)),   # x tile
        ],
        out_specs=pl.BlockSpec((tile_rows, lanes), lambda i: (i, 0)),
        compiler_params=pltpu.CompilerParams(
            dimension_semantics=("parallel",),
        ),
    )(params, x2d)

    out_flat = out2d.reshape(-1)
    if pad:
        out_flat = out_flat[:n]
    return out_flat.reshape(orig_shape)


def softplus_squared_ref(x, alpha=ALPHA_INIT):
    beta = alpha * alpha
    z = beta * x.astype(jnp.float32)
    sp = (jnp.maximum(z, 0.0) + jnp.log1p(jnp.exp(-jnp.abs(z)))) / beta
    return jnp.square(sp).astype(x.dtype)


if __name__ == "__main__":
    key = jax.random.PRNGKey(0)

    # Small NCHW-like input consistent with usage inside a conv net: (B, C, H, W)
    x = jax.random.normal(key, (2, 4, 16, 16), dtype=jnp.float32) * 0.1
    y = jax.block_until_ready(softplus_squared_pallas(x))
    y_ref = softplus_squared_ref(x)
    assert y.shape == x.shape and y.dtype == x.dtype
    assert jnp.allclose(y, y_ref, atol=1e-6, rtol=1e-5), "f32 mismatch vs reference"

    # Ragged size (exercises the pad fallback path).
    k1, k2 = jax.random.split(key)
    xr = jax.random.normal(k1, (3, 5, 7), dtype=jnp.float32) * 0.1
    yr = jax.block_until_ready(softplus_squared_pallas(xr))
    assert jnp.allclose(yr, softplus_squared_ref(xr), atol=1e-6, rtol=1e-5), "ragged mismatch"

    # bf16 I/O (math still done in f32 inside the kernel).
    xb = (jax.random.normal(k2, (2, 4, 16, 16), dtype=jnp.float32) * 0.1).astype(jnp.bfloat16)
    yb = jax.block_until_ready(softplus_squared_pallas(xb))
    assert yb.dtype == jnp.bfloat16
    assert jnp.allclose(yb.astype(jnp.float32),
                        softplus_squared_ref(xb).astype(jnp.float32),
                        atol=2e-3, rtol=2e-2), "bf16 mismatch"

    print("KERNEL_OK")
</pallas_src>

<mosaic_0001>
module attributes {stable_mosaic.version = 11 : i64} {
  func.func @_softplus_sq_kernel(%arg0: i32, %arg1: memref<2xf32, #tpu.memory_space<smem>>, %arg2: memref<1x2048xf32, #tpu.memory_space<vmem>>, %arg3: memref<1x2048xf32, #tpu.memory_space<vmem>>) attributes {dimension_semantics = [#tpu.dimension_semantics<parallel>], iteration_bounds = array<i64: 1>, scalar_prefetch = 0 : i64, scratch_operands = 0 : i64, tpu.core_type = #tpu.core_type<tc>, window_params = [{transform_indices = @transform_0, window_bounds = array<i64: 2>}, {transform_indices = @transform_1, window_bounds = array<i64: 1, 2048>}, {transform_indices = @transform_2, window_bounds = array<i64: 1, 2048>}]} {
    %c0 = arith.constant 0 : index
    %0 = memref.load %arg1[%c0] : memref<2xf32, #tpu.memory_space<smem>>
    %c1 = arith.constant 1 : index
    %1 = memref.load %arg1[%c1] : memref<2xf32, #tpu.memory_space<smem>>
    %c0_0 = arith.constant 0 : index
    %c0_1 = arith.constant 0 : index
    %2 = vector.load %arg2[%c0_0, %c0_1] : memref<1x2048xf32, #tpu.memory_space<vmem>>, vector<1x2048xf32>
    %3 = vector.broadcast %0 : f32 to vector<1x2048xf32>
    %4 = arith.mulf %3, %2 : vector<1x2048xf32>
    %cst = arith.constant 0.000000e+00 : f32
    %5 = vector.broadcast %cst : f32 to vector<1x2048xf32>
    %6 = arith.maximumf %4, %5 : vector<1x2048xf32>
    %7 = math.absf %4 : vector<1x2048xf32>
    %cst_2 = arith.constant 0.000000e+00 : f32
    %8 = vector.broadcast %cst_2 : f32 to vector<1x2048xf32>
    %9 = arith.subf %8, %7 : vector<1x2048xf32>
    %10 = math.exp %9 : vector<1x2048xf32>
    %11 = math.log1p %10 : vector<1x2048xf32>
    %12 = arith.addf %6, %11 : vector<1x2048xf32>
    %13 = vector.broadcast %1 : f32 to vector<1x2048xf32>
    %14 = arith.mulf %12, %13 : vector<1x2048xf32>
    %15 = arith.mulf %14, %14 : vector<1x2048xf32>
    %c0_3 = arith.constant 0 : index
    %c0_4 = arith.constant 0 : index
    %16 = vector.load %arg3[%c0_3, %c0_4] : memref<1x2048xf32, #tpu.memory_space<vmem>>, vector<1x2048xf32>
    tpu.vector_store %arg3[%c0_3, %c0_4], %15 {strides = array<i32>} : memref<1x2048xf32, #tpu.memory_space<vmem>>, vector<1x2048xf32>,
    return
  }
  func.func @transform_0(%arg0: i32) -> i32 {
    %c0_i32 = arith.constant 0 : i32
    %c0_i32_0 = arith.constant 0 : i32
    return %c0_i32 : i32
  }
  func.func @transform_1(%arg0: i32) -> (i32, i32) {
    %c0_i32 = arith.constant 0 : i32
    %c0_i32_0 = arith.constant 0 : i32
    return %arg0, %c0_i32 : i32, i32
  }
  func.func @transform_2(%arg0: i32) -> (i32, i32) {
    %c0_i32 = arith.constant 0 : i32
    %c0_i32_0 = arith.constant 0 : i32
    return %arg0, %c0_i32 : i32, i32
  }
}

</mosaic_0001>

<bundles_post_ra>
// kernel: tpu_custom_call.1
= control target key start
LH: loop header
LB: loop body
LE: loop exit
PB: predicated region body
PF: predicated region fallthrough
CT: control target
= control target key end

     0   :  { %7 = vsyncpa [#allocation5], 0  ;;  %s206_s0 = inlined_call_operand.hbm [shape: f32[2], index: 0, kind: input, shape index: {}]   ;;  %s207_s1 = inlined_call_operand.hbm [shape: f32[1,2048], index: 1, kind: input, shape index: {}]   ;;  %s208_s2 = inlined_call_operand.hbm [shape: f32[1,2048], index: 2, kind: output, shape index: {}]  }
   0x1   :  { %8 = vsyncpa [#allocation3], 0 }
   0x2   :  { %9 = vsyncpa [#allocation4], 0  ;;  %s15_s11 = sshll.u32 %s206_s0, 4  ;;  %s24_s14 = sshll.u32 %s207_s1, 4  ;;  %s16_s11 = int_to_ptr.hbm [resolvable:$true] %s15_s11  ;;  %s25_s14 = int_to_ptr.hbm [resolvable:$true] %s24_s14 }
   0x3   :  { %s179_s15 = smov [#allocation2]   ;;  %s180_s16 = smov [#allocation6]  }
   0x4   :  { %18 = dma.hbm_to_smem %s16_s11, 16, %s179_s15, [#allocation5]  }
   0x5   :  { %s26_s17 = sshll.u32 %s180_s16, 4  ;;  %s27_s17 = int_to_ptr.vmem [resolvable:$true] %s26_s17 }
   0x6   :  { %29 = dma.hbm_to_vmem [thread:$0]  %s25_s14, 256, %s27_s17, [#allocation3]  }
   0x7   :  { %173 = dma.done.wait [#allocation5], 16  }
   0x8   :  { %174 = vsyncadd [#allocation5], 4294967280 }
   0x9   :  { %175 = dma.done.wait [#allocation3], 256  }
   0xa   :  { %176 = vsyncadd [#allocation3], 4294967040 }
   0xb   :  { %38 = sfence }
   0xc   :  { %s39_s18 = sld [smem:[#allocation2]]  ;;  %v41_v0 = vld [vmem:[#allocation6] sm:$0xff]  ;;  %v42_v1 = vld [vmem:[#allocation6 + $0x8] sm:$0xff]  ;;  %s181_s1 = smov [#allocation7]  }
   0xd   :  { %s101_s0 = sld [smem:[#allocation2 + $0x1]]  ;;  %s88_s19 = sshll.u32 %s181_s1, 4  ;;  %s89_s19 = int_to_ptr.vmem [resolvable:$true] %s88_s19 }
   0xe   :  { %s90_s22 = sshll.u32 %s208_s2, 4  ;;  %s91_s22 = int_to_ptr.hbm [resolvable:$true] %s90_s22 }
  0x12   :  { %v43_v2 = vstv %s39_s18 }
  0x13   :  { %v44_v3 = vmul.f32 %v43_v2, %v41_v0  ;;  %v45_v4 = vmul.f32 %v43_v2, %v42_v1  ;;  %v76_v30 = vstv %s101_s0 }
  0x15   :  { %v48_v5 = vand.u32 2147483647, %v44_v3  ;;  %v49_v6 = vand.u32 2147483647, %v45_v4  ;;  %v46_v23 = vmax.f32 %v44_v3, 0.0  ;;  %v47_v27 = vmax.f32 %v45_v4, 0.0 }
  0x17   :  { %v50_v7 = vsub.f32 0.0, %v48_v5  ;;  %v51_v8 = vsub.f32 0.0, %v49_v6 }
  0x19   :  { %v52_v9 = vmul.f32 1.442695, %v50_v7  ;;  %v54_v10 = vmul.f32 1.442695, %v51_v8 }
  0x1b   :  { %105 = vpow2.f32 %v52_v9 }
  0x1c   :  { %107 = vpow2.f32 %v54_v10 }
  0x21   :  { %v106_v11 = vpop.eup %105 }
  0x22   :  { %v108_v12 = vpop.eup %107  ;;  %v56_v13 = vadd.f32 1.0, %v106_v11  ;;  %v59_v14 = vmul.f32 -0.5, %v106_v11  ;;  %v62_v18 = vand.u32 2147483647, %v106_v11 }
  0x23   :  { %v65_v15 = vadd.f32 1.0, %v108_v12  ;;  %v68_v16 = vmul.f32 -0.5, %v108_v12  ;;  %v71_v20 = vand.u32 2147483647, %v108_v12 }
  0x24   :  { %109 = vlog2.f32 %v56_v13  ;;  %v60_v17 = vadd.f32 1.0, %v59_v14  ;;  %vm63_vm0 = vcmp.lt.f32.partialorder %v62_v18, 0.0004427343 }
  0x25   :  { %111 = vlog2.f32 %v65_v15  ;;  %v69_v19 = vadd.f32 1.0, %v68_v16  ;;  %vm72_vm1 = vcmp.lt.f32.partialorder %v71_v20, 0.0004427343 }
  0x26   :  { %v61_v21 = vmul.f32 %v106_v11, %v60_v17 }
  0x27   :  { %v70_v24 = vmul.f32 %v108_v12, %v69_v19 }
  0x2a   :  { %v110_v22 = vpop.eup %109 }
  0x2b   :  { %v112_v25 = vpop.eup %111  ;;  %v58_v26 = vmul.f32 0.6931472, %v110_v22 }
  0x2c   :  { %v67_v28 = vmul.f32 0.6931472, %v112_v25 }
  0x2d   :  { %v64_v29 = vsel %vm63_vm0, %v61_v21, %v58_v26 }
  0x2e   :  { %v74_v31 = vadd.f32 %v64_v29, %v46_v23  ;;  %v73_v32 = vsel %vm72_vm1, %v70_v24, %v67_v28 }
  0x2f   :  { %v75_v33 = vadd.f32 %v73_v32, %v47_v27 }
  0x30   :  { %v77_v34 = vmul.f32 %v76_v30, %v74_v31 }
  0x31   :  { %v78_v35 = vmul.f32 %v76_v30, %v75_v33 }
  0x32   :  { %v79_v36 = vmul.f32 %v77_v34, %v77_v34 }
  0x33   :  { %v80_v37 = vmul.f32 %v78_v35, %v78_v35 }
  0x34   :  { %81 = vst [vmem:[#allocation7] sm:$0xff] %v79_v36 }
  0x35   :  { %82 = vst [vmem:[#allocation7 + $0x8] sm:$0xff] %v80_v37 }
  0x36   :  { %93 = dma.vmem_to_hbm [thread:$0]  %s89_s19, 256, %s91_s22, [#allocation4]  }
  0x37   :  { %177 = dma.done.wait [#allocation4], 256  }
  0x38   :  { %178 = vsyncadd [#allocation4], 4294967040 }
  0x39   :  { %98 = vsyncpa [#allocation3], 1 }
  0x3a   :  { %99 = vsyncpa [#allocation4], 1 }
  0x3b   :  { %100 = vsyncpa [#allocation5], 1 }

</bundles_post_ra>
